<compile_context>
chip_gen: v7x
topology: tpu7x:2x2x1
jax: 0.10.0
libtpu: 0.0.40
codegen_flags: <defaults>
</compile_context>

<pallas_src>
import jax
import jax.numpy as jnp
from jax.experimental import pallas as pl
from jax.experimental.pallas import tpu as pltpu

_LANE = 128
_SUBLANE = 8


def _round_up(v, m):
    return ((v + m - 1) // m) * m


def _linear_kernel(x_ref, w_ref, b_ref, o_ref):
    # x_ref: [TM, F], w_ref: [F, TN] (pre-transposed in wrapper),
    # b_ref: [1, TN], o_ref: [TM, TN].
    acc = jnp.dot(x_ref[...], w_ref[...], preferred_element_type=jnp.float32)
    o_ref[...] = (acc + b_ref[...]).astype(o_ref.dtype)


def _vmem_capacity_bytes():
    # Query physical VMEM; fall back to the smallest per-TensorCore capacity
    # across supported generations (v7x: 64 MiB) so tiling is always safe.
    try:
        info = pltpu.get_tpu_info()
        cap = getattr(info, "vmem_capacity_bytes", None)
        if cap:
            return int(cap)
    except Exception:
        pass
    return 64 * 1024 * 1024


def logistic_forward(x, weight, bias, *, block_rows=1024):
    """Forward pass of Logistic: x @ weight.T + bias.

    x:      [batch, features_num]        float32
    weight: [class_num, features_num]    (PyTorch nn.Linear layout, NOT transposed)
    bias:   [class_num]
    returns [batch, class_num]
    """
    B, F = x.shape
    C, F2 = weight.shape
    assert F == F2, "weight feature dim must match x"
    assert bias.shape == (C,)

    # One-time transpose of the (tiny) weight to [F, C]: far cheaper than any
    # per-grid-step relayout of the VMEM-resident weight inside the kernel.
    w_t = weight.T
    b2 = bias.reshape(1, C)

    # ---- per-generation VMEM budget ----------------------------------------
    vmem_cap = _vmem_capacity_bytes()
    vmem_target = min(vmem_cap // 2, 64 * 1024 * 1024)  # 64 MiB v5e/v6e, 32 MiB v7x

    # ---- class tile TN: full C if the resident weight fits, else 128-aligned -
    def _wb_bytes(tn):
        # double-buffered f32 weight block + bias block
        return 2 * 4 * (F + 1) * tn

    wb_budget = vmem_target // 2
    if _wb_bytes(C) <= wb_budget:
        TN = C  # block last dim == full array dim -> legal even if C % 128 != 0
    else:
        TN = max(_LANE, (wb_budget // (2 * 4 * (F + 1))) // _LANE * _LANE)
        TN = min(TN, _round_up(C, _LANE))

    # ---- batch tile TM: as big as the budget allows, but leave >= 2 grid
    # steps over the batch so v7x megacore has work for both TensorCores ------
    row_bytes = 2 * 4 * (F + TN)  # double-buffered f32 x row + out row
    avail = vmem_target - _wb_bytes(TN) - (1 << 20)  # 1 MiB headroom
    max_tm = max(_SUBLANE, (avail // row_bytes) // _SUBLANE * _SUBLANE)
    megacore_cap = _round_up(pl.cdiv(B, 2), _SUBLANE)
    TM = max(_SUBLANE, min(block_rows, max_tm, megacore_cap))

    footprint = row_bytes * TM + _wb_bytes(TN)
    vmem_limit = int(min(max(vmem_target, footprint + (2 << 20)), vmem_cap))

    grid = (pl.cdiv(B, TM), pl.cdiv(C, TN))  # partial last blocks handled by Pallas

    out = pl.pallas_call(
        _linear_kernel,
        out_shape=jax.ShapeDtypeStruct((B, C), x.dtype),
        grid_spec=pl.GridSpec(
            grid=grid,
            in_specs=[
                pl.BlockSpec((TM, F), lambda i, j: (i, 0)),  # x: strides over batch
                pl.BlockSpec((F, TN), lambda i, j: (0, j)),  # weight: resident per j
                pl.BlockSpec((1, TN), lambda i, j: (0, j)),  # bias:   resident per j
                # NOTE: pipeline_mode=pl.Buffered(1) on weight/bias would halve
                # their VMEM footprint (index_map is constant over the batch
                # axis); the budget above conservatively assumes the default
                # double-buffering so it is safe either way.
            ],
            out_specs=pl.BlockSpec((TM, TN), lambda i, j: (i, j)),
        ),
        compiler_params=pltpu.CompilerParams(
            dimension_semantics=("parallel", "parallel"),
            vmem_limit_bytes=vmem_limit,
        ),
        cost_estimate=pl.CostEstimate(
            flops=2 * B * F * C,
            transcendentals=0,
            bytes_accessed=4 * (B * F + F * C + B * C + C),
        ),
    )(x, w_t, b2)

    return out


# TODO(synk): `pred()`'s softmax is not part of forward(); if needed, fuse
# jnp.exp + pl.reciprocal(..., approx=True) on the accumulator before the store.


if __name__ == "__main__":
    # Small shapes consistent with the module: features_num=32, class_num=16, batch=8
    features_num = 32
    class_num = 16
    batch = 8

    key = jax.random.PRNGKey(0)
    kx, kw, kb = jax.random.split(key, 3)

    x = jax.random.normal(kx, (batch, features_num), dtype=jnp.float32)
    # PyTorch nn.Linear parameter shapes: W [C, F], b [C]
    weight = jax.random.normal(kw, (class_num, features_num), dtype=jnp.float32) * 0.1
    bias = jax.random.normal(kb, (class_num,), dtype=jnp.float32) * 0.1

    out = logistic_forward(x, weight, bias)
    out = jax.block_until_ready(out)

    # Pure-JAX reference check
    ref = x @ weight.T + bias
    assert out.shape == (batch, class_num)
    assert jnp.allclose(out, ref, atol=1e-5, rtol=1e-5)

    print("KERNEL_OK")
</pallas_src>

<mosaic_0001>
module attributes {stable_mosaic.version = 11 : i64} {
  func.func @_linear_kernel(%arg0: i32, %arg1: i32, %arg2: memref<8x32xf32, #tpu.memory_space<vmem>>, %arg3: memref<32x16xf32, #tpu.memory_space<vmem>>, %arg4: memref<1x16xf32, #tpu.memory_space<vmem>>, %arg5: memref<8x16xf32, #tpu.memory_space<vmem>>) attributes {dimension_semantics = [#tpu.dimension_semantics<parallel>, #tpu.dimension_semantics<parallel>], iteration_bounds = array<i64: 1, 1>, scalar_prefetch = 0 : i64, scratch_operands = 0 : i64, tpu.core_type = #tpu.core_type<tc>, window_params = [{transform_indices = @transform_0, window_bounds = array<i64: 8, 32>}, {transform_indices = @transform_1, window_bounds = array<i64: 32, 16>}, {transform_indices = @transform_2, window_bounds = array<i64: 1, 16>}, {transform_indices = @transform_3, window_bounds = array<i64: 8, 16>}]} {
    %c0 = arith.constant 0 : index
    %c0_0 = arith.constant 0 : index
    %0 = vector.load %arg2[%c0, %c0_0] : memref<8x32xf32, #tpu.memory_space<vmem>>, vector<8x32xf32>
    %c0_1 = arith.constant 0 : index
    %c0_2 = arith.constant 0 : index
    %1 = vector.load %arg3[%c0_1, %c0_2] : memref<32x16xf32, #tpu.memory_space<vmem>>, vector<32x16xf32>
    %cst = arith.constant dense<0.000000e+00> : vector<8x16xf32>
    %2 = tpu.matmul %0, %1, %cst {dimension_numbers = #tpu.dot_dimension_numbers<[1], [0], [0], [1], [0, 0, 1, 1], [], []>} : vector<8x32xf32>, vector<32x16xf32>, vector<8x16xf32> -> vector<8x16xf32>
    %c0_3 = arith.constant 0 : index
    %c0_4 = arith.constant 0 : index
    %3 = vector.load %arg4[%c0_3, %c0_4] : memref<1x16xf32, #tpu.memory_space<vmem>>, vector<1x16xf32>
    %4 = vector.broadcast %3 : vector<1x16xf32> to vector<8x16xf32>
    %5 = arith.addf %2, %4 : vector<8x16xf32>
    %c0_5 = arith.constant 0 : index
    %c0_6 = arith.constant 0 : index
    %6 = vector.load %arg5[%c0_5, %c0_6] : memref<8x16xf32, #tpu.memory_space<vmem>>, vector<8x16xf32>
    tpu.vector_store %arg5[%c0_5, %c0_6], %5 {strides = array<i32>} : memref<8x16xf32, #tpu.memory_space<vmem>>, vector<8x16xf32>,
    return
  }
  func.func @transform_0(%arg0: i32, %arg1: i32) -> (i32, i32) {
    %c0_i32 = arith.constant 0 : i32
    %c0_i32_0 = arith.constant 0 : i32
    return %arg0, %c0_i32 : i32, i32
  }
  func.func @transform_1(%arg0: i32, %arg1: i32) -> (i32, i32) {
    %c0_i32 = arith.constant 0 : i32
    %c0_i32_0 = arith.constant 0 : i32
    return %c0_i32, %arg1 : i32, i32
  }
  func.func @transform_2(%arg0: i32, %arg1: i32) -> (i32, i32) {
    %c0_i32 = arith.constant 0 : i32
    %c0_i32_0 = arith.constant 0 : i32
    return %c0_i32, %arg1 : i32, i32
  }
  func.func @transform_3(%arg0: i32, %arg1: i32) -> (i32, i32) {
    %c0_i32 = arith.constant 0 : i32
    return %arg0, %arg1 : i32, i32
  }
}

</mosaic_0001>

<bundles_post_ra>
// kernel: tpu_custom_call.1
= control target key start
LH: loop header
LB: loop body
LE: loop exit
PB: predicated region body
PF: predicated region fallthrough
CT: control target
= control target key end

     0   :  { %v169_v3 = vmov 0.0|0.0   ;;  %vm170_vm0 = vmmov 0   ;;  %v171_v6 = vmov 0.0   ;;  %s223_s0 = inlined_call_operand.vmem [shape: f32[8,32], index: 0, kind: input, shape index: {}]   ;;  %s224_s1 = inlined_call_operand.vmem [shape: f32[32,16], index: 1, kind: input, shape index: {}]   ;;  %s225_s2 = inlined_call_operand.vmem [shape: f32[1,16], index: 2, kind: input, shape index: {}]   ;;  %s226_s3 = inlined_call_operand.hbm [shape: f32[8,16], index: 3, kind: output, shape index: {}]  }
   0x1   :  { %v16_v0 = vld [vmem:[%s224_s1] sm:$0xff]  ;;  %v17_v1 = vld [vmem:[%s224_s1 + $0x8] sm:$0xff]  ;;  %v18_v2 = vld [vmem:[%s224_s1 + $0x10] sm:$0xff]  ;;  %135 = vmatprep.subr.bf16.mxu0 %v169_v3  ;;  %132 = vmatprep.mubr.msk.f32.mxu0 %vm170_vm0, %v171_v6 }
   0x2   :  { %v136_v4 = vpack.c.bf16 %v17_v1, %v16_v0  ;;  %v19_v5 = vld [vmem:[%s224_s1 + $0x18] sm:$0xff] }
   0x3   :  { %8 = vsyncpa [#allocation3], 0  ;;  %v139_v7 = vpack.c.bf16 %v19_v5, %v18_v2  ;;  %v15_v8 = vld [vmem:[%s223_s0] sm:$0xff]  ;;  %vm27_vm1 = vcmask 261120   ;;  %s172_s24 = smov [#allocation2]   ;;  %vm101_vm2 = vcmask 130048  }
   0x4   :  { %137 = vmatpush3.bf16.msra.mxu0 %v136_v4  ;;  %v117_v9 = vld [vmem:[%s225_s2] ss:$0 sm:$0xff]  ;;  %s109_s1 = sshll.u32 %s172_s24, 4  ;;  %s110_s1 = int_to_ptr.vmem [resolvable:$true] %s109_s1 }
   0x5   :  { %138 = vmatprep.subr.bf16.mxu0 %v169_v3  ;;  %s145_s25 = scalar_lea.vmem %s110_s1, 128  ;;  %p150_p1 = scmp.lt.s32.totalorder %s110_s1, %s110_s1 }
   0x6   :  { %p146_p0 = scmp.ne.s32.totalorder %s110_s1, %s145_s25  ;;  %p151_p2 = scmp.lt.s32.totalorder %s145_s25, %s145_s25 }
   0x8   :  { %140 = vmatpush3.bf16.msra.mxu0 %v139_v7  ;;  %p152_p3 = por %p151_p2, %p150_p1 }
   0xa   :  { %p153_p4 = pnand %p152_p3, %p146_p0 }
   0xb   :  { %133 = vmatmul.mubr.msk.f32.vlgmr.msra.gmra.mrb[0].mxu0 %vm27_vm1, %v15_v8 }
  0xde   :  { %v97_v10 = vpop.f32.mrb[0].mxu0 }
  0xdf   :  { %v98_v11 = vadd.f32 %v117_v9, %v97_v10  ;;  %v134_v12 = vpop.f32.mrb[1].mxu0 }
  0xe1   :  { %102 = vst.msk [vmem:[#allocation2] sm:$0xff] %vm101_vm2, %v98_v11 }
  0xe2   :  { %156 = shalt.err (!%p153_p4)
}
  0xe3   :  { %s157_s27 = scalar_lea.hbm %s226_s3, 128 }
  0xe4   :  { %p158_p5 = scmp.ne.s32.totalorder %s226_s3, %s157_s27  ;;  %p161_p6 = scmp.lt.u32.totalorder %s157_s27, %s226_s3 }
  0xe6   :  { %p163_p7 = pnand %p161_p6, %p158_p5 }
  0xe8   :  { %166 = shalt.err (!%p163_p7)
}
  0xe9   :  { %112 = dma.vmem_to_hbm [thread:$0]  %s110_s1, 128, %s226_s3, [#allocation3]  }
  0xea   :  { %167 = dma.done.wait [#allocation3], 128  }
  0xeb   :  { %168 = vsyncadd [#allocation3], 4294967168 }
  0xec   :  { %116 = vsyncpa [#allocation3], 1 }

</bundles_post_ra>
